<compile_context>
chip_gen: v6e
topology: v6e:2x2x1
jax: 0.10.0
libtpu: 0.0.40
codegen_flags: <defaults>
</compile_context>

<pallas_src>
import jax
import jax.numpy as jnp
from jax.experimental import pallas as pl
from jax.experimental.pallas import tpu as pltpu


def _skew_kernel(m_ref, o_ref):
    """Compute one (t, t) output tile of triu(M) - triu(M).T.

    m_ref holds the *upper-triangular* counterpart tile M[min(i,j), max(i,j)],
    which is the only tile any output tile needs:
      i < j : out = M[i, j]                (triu(M) == M there, transpose term is 0)
      i > j : out = -(M[j, i]).T           (triu(M) is 0 there)
      i == j: out = mask(M[i, i]) - mask(M[i, i]).T
    """
    i = pl.program_id(0)
    j = pl.program_id(1)

    # Strictly-upper output tiles: straight copy.
    @pl.when(i < j)
    def _():
        o_ref[...] = m_ref[...]

    # Strictly-lower output tiles: negate + small XLU transpose of the mirrored tile.
    @pl.when(i > j)
    def _():
        o_ref[...] = -m_ref[...].T

    # Diagonal tiles: only these need the triangular mask (VPU iota/compare/select).
    @pl.when(i == j)
    def _():
        m = m_ref[...]
        row = jax.lax.broadcasted_iota(jnp.int32, m.shape, 0)
        col = jax.lax.broadcasted_iota(jnp.int32, m.shape, 1)
        upper = jnp.where(row <= col, m, jnp.zeros_like(m))
        o_ref[...] = upper - upper.T


def _pick_tile(n: int) -> int:
    """Lane-dense square tile size; small n collapses to one full-array block."""
    if n <= 512:
        # Single full-array block: always legal (block == array dims), tiny VMEM.
        return n
    try:
        kind = jax.devices()[0].device_kind
    except Exception:  # pragma: no cover - defensive
        kind = ""
    # v7x: HBM is fast enough that 512-tile DMA (~0.65 us) is comparable to the
    # per-grid-step overhead, so use 1024 tiles once matrices are big enough.
    if "7" in kind and n >= 2048:
        return 1024
    return 512


def skew_symmetric_matrix(mat: jax.Array) -> jax.Array:
    n = mat.shape[0]
    t = _pick_tile(n)
    nblk = pl.cdiv(n, t)  # partial edge blocks are handled by Pallas

    params = {"dimension_semantics": ("parallel", "parallel")}
    if t >= 1024:
        # 2 arrays x 2 buffers x 4 MiB = 16 MiB; leave explicit headroom above the
        # default scoped limit rather than riding its edge.
        params["vmem_limit_bytes"] = 48 << 20

    return pl.pallas_call(
        _skew_kernel,
        out_shape=jax.ShapeDtypeStruct((n, n), mat.dtype),
        grid=(nblk, nblk),
        in_specs=[
            # Single de-duplicated input: every output tile only needs the
            # upper-triangular counterpart tile of M.
            pl.BlockSpec(
                (t, t),
                lambda i, j: (jnp.minimum(i, j), jnp.maximum(i, j)),
            ),
        ],
        out_specs=pl.BlockSpec((t, t), lambda i, j: (i, j)),
        compiler_params=pltpu.CompilerParams(**params),
    )(mat)


if __name__ == "__main__":
    key = jax.random.PRNGKey(0)
    # n=32  : the module's own scale (single full-array block path).
    # n=1024: 2x2 grid of 512 tiles (exercises i<j / i>j / i==j + min/max index map).
    # n=640 : cdiv grid with partial edge blocks (the fixed non-divisible-n path).
    for n in (32, 1024, 640):
        mat = jax.random.normal(jax.random.fold_in(key, n), (n, n), dtype=jnp.float32)

        out = jax.block_until_ready(skew_symmetric_matrix(mat))

        # Reference semantics (pure JAX): upper = triu(M); out = upper - upper.T.
        ref_upper = jnp.triu(mat)
        ref = ref_upper - ref_upper.T
        assert out.shape == (n, n)
        assert out.dtype == jnp.float32
        assert jnp.allclose(out, ref, atol=1e-6), f"mismatch vs reference (n={n})"
        assert jnp.allclose(out, -out.T, atol=1e-6), f"not skew-symmetric (n={n})"

    print("KERNEL_OK")
</pallas_src>

<mosaic_0001>
module attributes {stable_mosaic.version = 11 : i64} {
  func.func @_skew_kernel(%arg0: i32, %arg1: i32, %arg2: memref<32x32xf32, #tpu.memory_space<vmem>>, %arg3: memref<32x32xf32, #tpu.memory_space<vmem>>) attributes {dimension_semantics = [#tpu.dimension_semantics<parallel>, #tpu.dimension_semantics<parallel>], iteration_bounds = array<i64: 1, 1>, scalar_prefetch = 0 : i64, scratch_operands = 0 : i64, tpu.core_type = #tpu.core_type<tc>, window_params = [{transform_indices = @transform_0, window_bounds = array<i64: 32, 32>}, {transform_indices = @transform_1, window_bounds = array<i64: 32, 32>}]} {
    %0 = arith.cmpi slt, %arg0, %arg1 : i32
    %1 = arith.extui %0 : i1 to i32
    %c0_i32 = arith.constant 0 : i32
    %2 = arith.cmpi ne, %1, %c0_i32 : i32
    scf.if %2 {
      %c0 = arith.constant 0 : index
      %c0_2 = arith.constant 0 : index
      %9 = vector.load %arg2[%c0, %c0_2] : memref<32x32xf32, #tpu.memory_space<vmem>>, vector<32x32xf32>
      %c0_3 = arith.constant 0 : index
      %c0_4 = arith.constant 0 : index
      %10 = vector.load %arg3[%c0_3, %c0_4] : memref<32x32xf32, #tpu.memory_space<vmem>>, vector<32x32xf32>
      tpu.vector_store %arg3[%c0_3, %c0_4], %9 {strides = array<i32>} : memref<32x32xf32, #tpu.memory_space<vmem>>, vector<32x32xf32>,
    } else {
    }
    %3 = arith.cmpi sgt, %arg0, %arg1 : i32
    %4 = arith.extui %3 : i1 to i32
    %c0_i32_0 = arith.constant 0 : i32
    %5 = arith.cmpi ne, %4, %c0_i32_0 : i32
    scf.if %5 {
      %c0 = arith.constant 0 : index
      %c0_2 = arith.constant 0 : index
      %9 = vector.load %arg2[%c0, %c0_2] : memref<32x32xf32, #tpu.memory_space<vmem>>, vector<32x32xf32>
      %10 = tpu.transpose %9, [1, 0] : vector<32x32xf32> -> vector<32x32xf32>
      %cst = arith.constant 0.000000e+00 : f32
      %11 = vector.broadcast %cst : f32 to vector<32x32xf32>
      %12 = arith.subf %11, %10 : vector<32x32xf32>
      %c0_3 = arith.constant 0 : index
      %c0_4 = arith.constant 0 : index
      %13 = vector.load %arg3[%c0_3, %c0_4] : memref<32x32xf32, #tpu.memory_space<vmem>>, vector<32x32xf32>
      tpu.vector_store %arg3[%c0_3, %c0_4], %12 {strides = array<i32>} : memref<32x32xf32, #tpu.memory_space<vmem>>, vector<32x32xf32>,
    } else {
    }
    %6 = arith.cmpi eq, %arg0, %arg1 : i32
    %7 = arith.extui %6 : i1 to i32
    %c0_i32_1 = arith.constant 0 : i32
    %8 = arith.cmpi ne, %7, %c0_i32_1 : i32
    scf.if %8 {
      %c0 = arith.constant 0 : index
      %c0_2 = arith.constant 0 : index
      %9 = vector.load %arg2[%c0, %c0_2] : memref<32x32xf32, #tpu.memory_space<vmem>>, vector<32x32xf32>
      %10 = tpu.iota {dimensions = array<i32: 0>} : vector<32x32xi32>
      %11 = tpu.iota {dimensions = array<i32: 1>} : vector<32x32xi32>
      %12 = arith.cmpi sle, %10, %11 : vector<32x32xi32>
      %cst = arith.constant 0.000000e+00 : f32
      %13 = vector.broadcast %cst : f32 to vector<32x32xf32>
      %14 = arith.select %12, %9, %13 : vector<32x32xi1>, vector<32x32xf32>
      %15 = tpu.transpose %14, [1, 0] : vector<32x32xf32> -> vector<32x32xf32>
      %16 = arith.subf %14, %15 : vector<32x32xf32>
      %c0_3 = arith.constant 0 : index
      %c0_4 = arith.constant 0 : index
      %17 = vector.load %arg3[%c0_3, %c0_4] : memref<32x32xf32, #tpu.memory_space<vmem>>, vector<32x32xf32>
      tpu.vector_store %arg3[%c0_3, %c0_4], %16 {strides = array<i32>} : memref<32x32xf32, #tpu.memory_space<vmem>>, vector<32x32xf32>,
    } else {
    }
    return
  }
  func.func @transform_0(%arg0: i32, %arg1: i32) -> (i32, i32) {
    %0 = arith.minsi %arg0, %arg1 : i32
    %1 = arith.maxsi %arg0, %arg1 : i32
    %c0_i32 = arith.constant 0 : i32
    return %0, %1 : i32, i32
  }
  func.func @transform_1(%arg0: i32, %arg1: i32) -> (i32, i32) {
    %c0_i32 = arith.constant 0 : i32
    return %arg0, %arg1 : i32, i32
  }
}

</mosaic_0001>

<bundles_post_ra>
// kernel: tpu_custom_call.1
= control target key start
LH: loop header
LB: loop body
LE: loop exit
PB: predicated region body
PF: predicated region fallthrough
CT: control target
= control target key end

     0   :  { %6 = vsyncpa [#allocation3], 0  ;;  %s241_s0 = inlined_call_operand.hbm [shape: f32[32,32], index: 0, kind: input, shape index: {}]   ;;  %s242_s1 = inlined_call_operand.hbm [shape: f32[32,32], index: 1, kind: output, shape index: {}]  }
   0x1   :  { %7 = vsyncpa [#allocation4], 0  ;;  %s215_s6 = smov [#allocation2]  }
   0x2   :  { %s13_s7 = sshll.u32 %s215_s6, 4  ;;  %s14_s7 = int_to_ptr.vmem [resolvable:$true] %s13_s7 }
   0x3   :  { %s179_s8 = scalar_lea.vmem %s14_s7, 512  ;;  %p184_p1 = scmp.lt.s32.totalorder %s14_s7, %s14_s7 }
   0x4   :  { %p180_p0 = scmp.ne.s32.totalorder %s14_s7, %s179_s8  ;;  %p185_p2 = scmp.lt.s32.totalorder %s179_s8, %s179_s8 }
   0x6   :  { %p186_p3 = por %p185_p2, %p184_p1 }
   0x8   :  { %p187_p4 = pnand %p186_p3, %p180_p0 }
   0xa   :  { %190 = shalt.err (!%p187_p4)
}
   0xb   :  { %s216_s9 = smov 128   ;;  %s217_s10 = smov 8  }
   0xc   :  { %19 = dma.hbm_to_vmem [thread:$0]  %s241_s0, 512, %s14_s7, [#allocation3], %s216_s9, %s216_s9, %s217_s10  }
   0xd   :  { %211 = dma.done.wait [#allocation3], 512  }
   0xe   :  { %212 = vsyncadd [#allocation3], 4294966784  ;;  %v93_v0 = vlaneseq  ;;  %v89_v4 = vld [vmem:[#allocation2] sm:$0xff]  ;;  %v90_v5 = vld [vmem:[#allocation2 + $0x8] sm:$0xff]  ;;  %vm144_vm4 = vcmask 261120   ;;  %s218_s0 = smov [#allocation5]  }
   0xf   :  { %v91_v9 = vld [vmem:[#allocation2 + $0x10] sm:$0xff]  ;;  %v92_v12 = vld [vmem:[#allocation2 + $0x18] sm:$0xff]  ;;  %s154_s13 = sshll.u32 %s218_s0, 4  ;;  %s155_s13 = int_to_ptr.vmem [resolvable:$true] %s154_s13 }
  0x10   :  { %v94_v1 = vshrl.u32 %v93_v0, 7  ;;  %v99_v2 = vand.u32 127, %v93_v0  ;;  %s191_s14 = scalar_lea.vmem %s155_s13, 512  ;;  %p196_p6 = scmp.lt.s32.totalorder %s155_s13, %s155_s13 }
  0x11   :  { %p192_p5 = scmp.ne.s32.totalorder %s155_s13, %s191_s14  ;;  %p197_p7 = scmp.lt.s32.totalorder %s191_s14, %s191_s14 }
  0x12   :  { %v95_v3 = vadd.s32 8, %v94_v1  ;;  %vm100_vm0 = vcmp.le.s32.totalorder %v94_v1, %v99_v2  ;;  %v96_v6 = vadd.s32 16, %v94_v1  ;;  %v97_v10 = vadd.s32 24, %v94_v1 }
  0x13   :  { %v104_v7 = vsel %vm100_vm0, %v89_v4, 0.0  ;;  %p198_p8 = por %p197_p7, %p196_p6 }
  0x14   :  { %vm101_vm1 = vcmp.le.s32.totalorder %v95_v3, %v99_v2  ;;  %108 = vxpose.xlu0.b32.start [1/4] (short) (narrow) %v104_v7, 32  ;;  %vm102_vm2 = vcmp.le.s32.totalorder %v96_v6, %v99_v2  ;;  %vm103_vm3 = vcmp.le.s32.totalorder %v97_v10, %v99_v2 }
  0x15   :  { %v105_v8 = vsel %vm101_vm1, %v90_v5, 0.0  ;;  %v106_v11 = vsel %vm102_vm2, %v91_v9, 0.0  ;;  %v107_v13 = vsel %vm103_vm3, %v92_v12, 0.0  ;;  %p199_p9 = pnand %p198_p8, %p192_p5 }
  0x18   :  { %109 = vxpose.xlu0.b32.cont [2/4] (short) (narrow) %v105_v8, 32 }
  0x1c   :  { %110 = vxpose.xlu0.b32.cont [3/4] (short) (narrow) %v106_v11, 32 }
  0x20   :  { %111 = vxpose.xlu0.b32.end [4/4] (short) (narrow) %v107_v13, 32 }
  0x90   :  { %v124_v14 = vpop.trf.xlu0 }
  0x91   :  { %v140_v15 = vsub.f32 %v104_v7, %v124_v14 }
  0x93   :  { %145 = vst.msk [vmem:[#allocation5] sm:$0xff] %vm144_vm4, %v140_v15 }
  0x94   :  { %v125_v16 = vpop.trf.xlu0 }
  0x95   :  { %v141_v17 = vsub.f32 %v105_v8, %v125_v16 }
  0x97   :  { %146 = vst.msk [vmem:[#allocation5 + $0x8] sm:$0xff] %vm144_vm4, %v141_v17 }
  0x98   :  { %v126_v18 = vpop.trf.xlu0 }
  0x99   :  { %v142_v19 = vsub.f32 %v106_v11, %v126_v18 }
  0x9b   :  { %147 = vst.msk [vmem:[#allocation5 + $0x10] sm:$0xff] %vm144_vm4, %v142_v19 }
  0x9c   :  { %v127_v20 = vpop.trf.xlu0 }
  0x9d   :  { %v143_v21 = vsub.f32 %v107_v13, %v127_v20 }
  0x9f   :  { %148 = vst.msk [vmem:[#allocation5 + $0x18] sm:$0xff] %vm144_vm4, %v143_v21 }
  0xa0   :  { %202 = shalt.err (!%p199_p9)
}
  0xa1   :  { %160 = dma.vmem_to_hbm [thread:$0]  %s155_s13, 512, %s242_s1, [#allocation4], %s216_s9, %s216_s9, %s217_s10  }
  0xa2   :  { %213 = dma.done.wait [#allocation4], 512  }
  0xa3   :  { %214 = vsyncadd [#allocation4], 4294966784 }
  0xa4   :  { %164 = vsyncpa [#allocation3], 1 }
  0xa5   :  { %165 = vsyncpa [#allocation4], 1 }

</bundles_post_ra>
